<compile_context>
chip_gen: v5e
topology: v5e:2x2
jax: 0.10.0
libtpu: 0.0.40
codegen_flags: <defaults>
</compile_context>

<pallas_src>
import jax
import jax.numpy as jnp
from jax.experimental import pallas as pl
from jax.experimental.pallas import tpu as pltpu

_HID = 128        # hidden width of all FeaStConv layers
_IN = 6           # cat([pos(3), norm(3)])
_OUT = 3          # linear_2 output channels
_ROW_ALIGN = 128  # pad node count to a multiple of this (lane-dense adjacency)


# ----------------------------- Pallas kernel ------------------------------- #

def _gcn_fused_kernel(adj_ref, inv_deg_ref, xw1_ref,
                      b1_ref, w2_ref, b2_ref, w3_ref, b3_ref,
                      w4_ref, b4_ref, w5_ref, b5_ref, out_ref):
    """Single-step fused forward (everything VMEM-resident).

    adj_ref     : (N_pad, N_pad) int8   edge counts (row = target i, col = source j)
    inv_deg_ref : (N_pad, 1)     f32    1 / in-degree (0 for isolated rows)
    xw1_ref     : (N_pad, 128)   bf16   X @ W1 (layer-1 feature transform, preamble)
    w*_ref      : (128, 128)     bf16   weights (w5 zero-padded 3 -> 128 cols)
    b*_ref      : (1, 128)       f32    biases  (b5 zero-padded)
    out_ref     : (N_pad, 128)   f32    linear_2 output (cols 3..127 are zero pad)
    """
    a = adj_ref[...].astype(jnp.bfloat16)        # counts <= 127: exact in bf16
    inv_deg = inv_deg_ref[...]                   # f32 row scale (exact 1/deg)

    def aggregate(h_bf16):                       # scatter-mean over in-neighbours
        s = jnp.dot(a, h_bf16, preferred_element_type=jnp.float32)
        return s * inv_deg

    # g_conv1: relu(mean_agg(X @ W1) + b1)
    h = jnp.maximum(aggregate(xw1_ref[...]) + b1_ref[...], 0.0)
    h = h.astype(jnp.bfloat16)

    # g_conv2..4: relu(mean_agg(h) @ W + b)   (static 3-iteration unroll)
    for w_ref, b_ref in ((w2_ref, b2_ref), (w3_ref, b3_ref), (w4_ref, b4_ref)):
        agg = aggregate(h).astype(jnp.bfloat16)
        h = jnp.maximum(
            jnp.dot(agg, w_ref[...], preferred_element_type=jnp.float32)
            + b_ref[...], 0.0).astype(jnp.bfloat16)

    # linear_2 (128 output lanes -> lane-dense stores; sliced to 3 outside)
    out_ref[...] = (jnp.dot(h, w5_ref[...], preferred_element_type=jnp.float32)
                    + b5_ref[...])


# ------------------------------ wrapper ------------------------------------ #

def gcn_fused(adj_i8, inv_deg, xw1_bf16, b1, w2, b2, w3, b3, w4, b4, w5, b5):
    n_pad = adj_i8.shape[0]

    # Everything is VMEM-resident; budget it explicitly (the default scoped
    # VMEM is only 16 MiB on v5e / 32 MiB on v6e,v7x).
    resident = (adj_i8.size                       # int8 adjacency
                + n_pad * (_HID * 2 + 4)          # xw1 (bf16) + inv_deg (f32)
                + 4 * _HID * _HID * 2             # bf16 weights
                + 5 * _HID * 4                    # f32 biases
                + n_pad * _HID * 4)               # f32 output
    temporaries = (n_pad * n_pad * 2              # bf16 upconvert of adjacency
                   + 4 * n_pad * _HID * 4)        # h / agg intermediates
    assert resident + temporaries < (96 << 20), (
        "graph too large for the VMEM-resident kernel; needs the CSR path")
    vmem_limit = min(128 << 20,
                     max(32 << 20, 2 * (resident + temporaries) + (2 << 20)))

    flops = 2 * n_pad * n_pad * _HID * 4 + 2 * n_pad * _HID * _HID * 4
    bytes_accessed = int(resident)

    vmem_specs = [pl.BlockSpec(memory_space=pltpu.MemorySpace.VMEM)
                  for _ in range(12)]
    return pl.pallas_call(
        _gcn_fused_kernel,
        out_shape=jax.ShapeDtypeStruct((n_pad, _HID), jnp.float32),
        in_specs=vmem_specs,
        out_specs=pl.BlockSpec(memory_space=pltpu.MemorySpace.VMEM),
        compiler_params=pltpu.CompilerParams(vmem_limit_bytes=int(vmem_limit)),
        cost_estimate=pl.CostEstimate(flops=int(flops), transcendentals=0,
                                      bytes_accessed=bytes_accessed),
    )(adj_i8, inv_deg, xw1_bf16, b1, w2, b2, w3, b3, w4, b4, w5, b5)


# --------------------------- parameters / glue ------------------------------ #

def _lin_init(key, c_in, c_out, pad_out=None):
    """Kaiming-uniform-ish init (deterministic); zero-pad output channels."""
    bound = 1.0 / jnp.sqrt(jnp.float32(c_in))
    kw, kb = jax.random.split(key)
    w = jax.random.uniform(kw, (c_in, c_out), jnp.float32, -bound, bound)
    b = jax.random.uniform(kb, (1, c_out), jnp.float32, -bound, bound)
    pad_out = pad_out or c_out
    if pad_out > c_out:
        w = jnp.pad(w, ((0, 0), (0, pad_out - c_out)))
        b = jnp.pad(b, ((0, 0), (0, pad_out - c_out)))
    return w, b


def init_params(key):
    k = jax.random.split(key, 5)
    return {
        "g_conv1": _lin_init(k[0], _IN, _HID),
        "g_conv2": _lin_init(k[1], _HID, _HID),
        "g_conv3": _lin_init(k[2], _HID, _HID),
        "g_conv4": _lin_init(k[3], _HID, _HID),
        # linear_2: real W is [128, 3]; computed 128 lanes wide in the kernel
        # (lane-dense stores) and sliced back to 3 columns outside.
        "linear_2": _lin_init(k[4], _HID, _OUT, pad_out=_HID),
    }


def _pad_rows(n):
    return max(_ROW_ALIGN, ((n + _ROW_ALIGN - 1) // _ROW_ALIGN) * _ROW_ALIGN)


def build_adj(edge_index, n_pad):
    """int8 edge-count adjacency + f32 1/deg column (exact scatter-mean).

    edge_index[0] = source j, edge_index[1] = target i (PyG convention).
    Built directly in int8 (no dense f32 N^2 temporary); degree is an O(E)
    scatter-add.  Padded rows/cols stay zero, so padding never contaminates
    real nodes; zero in-degree rows aggregate to 0 (matches scatter-mean).
    """
    src, dst = edge_index[0], edge_index[1]
    # TODO(synk): int8 counts overflow for >127 parallel edges per (i, j) pair.
    adj = jnp.zeros((n_pad, n_pad), jnp.int8).at[dst, src].add(jnp.int8(1))
    deg = jnp.zeros((n_pad,), jnp.float32).at[dst].add(1.0)
    inv_deg = jnp.where(deg > 0, 1.0 / jnp.maximum(deg, 1.0), 0.0)
    return adj, inv_deg.reshape(n_pad, 1)


def gcn_forward(pos, norm, edge_index, params):
    n = pos.shape[0]
    n_pad = _pad_rows(n)
    x = jnp.concatenate([pos, norm], axis=1).astype(jnp.float32)   # [N, 6]
    x = jnp.pad(x, ((0, n_pad - n), (0, 0)))                       # [N_pad, 6]
    adj, inv_deg = build_adj(edge_index, n_pad)

    w1, b1 = params["g_conv1"]
    # Layer-1 feature transform as a tiny f32 preamble ([N,6] @ [6,128]); the
    # kernel then aggregates A_mean @ (X W1) — avoids padding X 6 -> 128.
    xw1 = jnp.dot(x, w1, preferred_element_type=jnp.float32)       # [N_pad, 128]

    bf = lambda t: t.astype(jnp.bfloat16)
    w2, b2 = params["g_conv2"]
    w3, b3 = params["g_conv3"]
    w4, b4 = params["g_conv4"]
    w5, b5 = params["linear_2"]

    out = gcn_fused(adj, inv_deg, bf(xw1),
                    b1, bf(w2), b2, bf(w3), b3, bf(w4), b4, bf(w5), b5)
    return out[:n, :_OUT]                                          # [N, 3]


# ------------------------------ references ---------------------------------- #

def gcn_forward_ref_bf16(pos, norm, edge_index, params):
    """Pure-JAX reference applying the same bf16-input / f32-accumulate math."""
    n = pos.shape[0]
    n_pad = _pad_rows(n)
    x = jnp.concatenate([pos, norm], axis=1).astype(jnp.float32)
    x = jnp.pad(x, ((0, n_pad - n), (0, 0)))
    adj, inv_deg = build_adj(edge_index, n_pad)
    a = adj.astype(jnp.bfloat16)

    def agg(h_bf16):
        return jnp.dot(a, h_bf16, preferred_element_type=jnp.float32) * inv_deg

    w1, b1 = params["g_conv1"]
    h = jnp.dot(x, w1, preferred_element_type=jnp.float32).astype(jnp.bfloat16)
    h = jnp.maximum(agg(h) + b1, 0.0).astype(jnp.bfloat16)
    for name in ("g_conv2", "g_conv3", "g_conv4"):
        w, b = params[name]
        h = jnp.maximum(
            jnp.dot(agg(h).astype(jnp.bfloat16), w.astype(jnp.bfloat16),
                    preferred_element_type=jnp.float32) + b, 0.0
        ).astype(jnp.bfloat16)
    w, b = params["linear_2"]
    y = jnp.dot(h, w.astype(jnp.bfloat16),
                preferred_element_type=jnp.float32) + b
    return y[:n, :_OUT]


def gcn_forward_ref_f32(pos, norm, edge_index, params):
    """Pure-f32 reference of the module's math (loose sanity check)."""
    n = pos.shape[0]
    x = jnp.concatenate([pos, norm], axis=1).astype(jnp.float32)
    src, dst = edge_index[0], edge_index[1]
    a = jnp.zeros((n, n), jnp.float32).at[dst, src].add(1.0)
    deg = a.sum(axis=1, keepdims=True)
    a = a * jnp.where(deg > 0, 1.0 / jnp.maximum(deg, 1.0), 0.0)
    w1, b1 = params["g_conv1"]
    h = jnp.maximum(a @ (x @ w1) + b1, 0.0)
    for name in ("g_conv2", "g_conv3", "g_conv4"):
        w, b = params[name]
        h = jnp.maximum(a @ h @ w + b, 0.0)
    w, b = params["linear_2"]
    return (h @ w + b)[:, :_OUT]


# --------------------------------- main ------------------------------------- #

if __name__ == "__main__":
    key = jax.random.PRNGKey(0)
    k_pos, k_norm, k_src, k_dst, k_param = jax.random.split(key, 5)

    N, E = 64, 256
    pos = jax.random.normal(k_pos, (N, 3), jnp.float32)
    nrm = jax.random.normal(k_norm, (N, 3), jnp.float32)
    nrm = nrm / jnp.linalg.norm(nrm, axis=1, keepdims=True)
    edge_index = jnp.stack(
        [
            jax.random.randint(k_src, (E,), 0, N),   # source j
            jax.random.randint(k_dst, (E,), 0, N),   # target i
        ],
        axis=0,
    )  # [2, E]

    params = init_params(k_param)

    out = jax.block_until_ready(gcn_forward(pos, nrm, edge_index, params))
    assert out.shape == (N, _OUT) and out.dtype == jnp.float32

    # Tight check vs. a reference applying the identical bf16/f32 mixed math.
    ref_bf16 = jax.block_until_ready(
        gcn_forward_ref_bf16(pos, nrm, edge_index, params))
    assert jnp.allclose(out, ref_bf16, atol=1e-3, rtol=1e-3), (
        float(jnp.max(jnp.abs(out - ref_bf16))))

    # Loose sanity check vs. the pure-f32 module math (bf16 MXU inputs).
    ref_f32 = jax.block_until_ready(
        gcn_forward_ref_f32(pos, nrm, edge_index, params))
    assert jnp.allclose(out, ref_f32, atol=5e-2, rtol=5e-2), (
        float(jnp.max(jnp.abs(out - ref_f32))))

    print("KERNEL_OK")
</pallas_src>

<mosaic_0001>
module attributes {stable_mosaic.version = 11 : i64} {
  func.func @_gcn_fused_kernel(%arg0: memref<128x128xi8, #tpu.memory_space<vmem>>, %arg1: memref<128x1xf32, #tpu.memory_space<vmem>>, %arg2: memref<128x128xbf16, #tpu.memory_space<vmem>>, %arg3: memref<1x128xf32, #tpu.memory_space<vmem>>, %arg4: memref<128x128xbf16, #tpu.memory_space<vmem>>, %arg5: memref<1x128xf32, #tpu.memory_space<vmem>>, %arg6: memref<128x128xbf16, #tpu.memory_space<vmem>>, %arg7: memref<1x128xf32, #tpu.memory_space<vmem>>, %arg8: memref<128x128xbf16, #tpu.memory_space<vmem>>, %arg9: memref<1x128xf32, #tpu.memory_space<vmem>>, %arg10: memref<128x128xbf16, #tpu.memory_space<vmem>>, %arg11: memref<1x128xf32, #tpu.memory_space<vmem>>, %arg12: memref<128x128xf32, #tpu.memory_space<vmem>>) attributes {dimension_semantics = [], scalar_prefetch = 0 : i64, scratch_operands = 0 : i64, tpu.core_type = #tpu.core_type<tc>} {
    %c0 = arith.constant 0 : index
    %c0_0 = arith.constant 0 : index
    %0 = vector.load %arg0[%c0, %c0_0] : memref<128x128xi8, #tpu.memory_space<vmem>>, vector<128x128xi8>
    %1 = arith.sitofp %0 : vector<128x128xi8> to vector<128x128xbf16>
    %c0_1 = arith.constant 0 : index
    %c0_2 = arith.constant 0 : index
    %2 = vector.load %arg1[%c0_1, %c0_2] : memref<128x1xf32, #tpu.memory_space<vmem>>, vector<128x1xf32>
    %c0_3 = arith.constant 0 : index
    %c0_4 = arith.constant 0 : index
    %3 = vector.load %arg2[%c0_3, %c0_4] : memref<128x128xbf16, #tpu.memory_space<vmem>>, vector<128x128xbf16>
    %cst = arith.constant dense<0.000000e+00> : vector<128x128xf32>
    %4 = tpu.matmul %1, %3, %cst {dimension_numbers = #tpu.dot_dimension_numbers<[1], [0], [0], [1], [0, 0, 1, 1], [], []>} : vector<128x128xbf16>, vector<128x128xbf16>, vector<128x128xf32> -> vector<128x128xf32>
    %5 = vector.broadcast %2 : vector<128x1xf32> to vector<128x128xf32>
    %6 = arith.mulf %4, %5 : vector<128x128xf32>
    %c0_5 = arith.constant 0 : index
    %c0_6 = arith.constant 0 : index
    %7 = vector.load %arg3[%c0_5, %c0_6] : memref<1x128xf32, #tpu.memory_space<vmem>>, vector<1x128xf32>
    %8 = vector.broadcast %7 : vector<1x128xf32> to vector<128x128xf32>
    %9 = arith.addf %6, %8 : vector<128x128xf32>
    %cst_7 = arith.constant 0.000000e+00 : f32
    %10 = vector.broadcast %cst_7 : f32 to vector<128x128xf32>
    %11 = arith.maximumf %9, %10 : vector<128x128xf32>
    %12 = arith.truncf %11 : vector<128x128xf32> to vector<128x128xbf16>
    %cst_8 = arith.constant dense<0.000000e+00> : vector<128x128xf32>
    %13 = tpu.matmul %1, %12, %cst_8 {dimension_numbers = #tpu.dot_dimension_numbers<[1], [0], [0], [1], [0, 0, 1, 1], [], []>} : vector<128x128xbf16>, vector<128x128xbf16>, vector<128x128xf32> -> vector<128x128xf32>
    %14 = vector.broadcast %2 : vector<128x1xf32> to vector<128x128xf32>
    %15 = arith.mulf %13, %14 : vector<128x128xf32>
    %16 = arith.truncf %15 : vector<128x128xf32> to vector<128x128xbf16>
    %c0_9 = arith.constant 0 : index
    %c0_10 = arith.constant 0 : index
    %17 = vector.load %arg4[%c0_9, %c0_10] : memref<128x128xbf16, #tpu.memory_space<vmem>>, vector<128x128xbf16>
    %cst_11 = arith.constant dense<0.000000e+00> : vector<128x128xf32>
    %18 = tpu.matmul %16, %17, %cst_11 {dimension_numbers = #tpu.dot_dimension_numbers<[1], [0], [0], [1], [0, 0, 1, 1], [], []>} : vector<128x128xbf16>, vector<128x128xbf16>, vector<128x128xf32> -> vector<128x128xf32>
    %c0_12 = arith.constant 0 : index
    %c0_13 = arith.constant 0 : index
    %19 = vector.load %arg5[%c0_12, %c0_13] : memref<1x128xf32, #tpu.memory_space<vmem>>, vector<1x128xf32>
    %20 = vector.broadcast %19 : vector<1x128xf32> to vector<128x128xf32>
    %21 = arith.addf %18, %20 : vector<128x128xf32>
    %cst_14 = arith.constant 0.000000e+00 : f32
    %22 = vector.broadcast %cst_14 : f32 to vector<128x128xf32>
    %23 = arith.maximumf %21, %22 : vector<128x128xf32>
    %24 = arith.truncf %23 : vector<128x128xf32> to vector<128x128xbf16>
    %cst_15 = arith.constant dense<0.000000e+00> : vector<128x128xf32>
    %25 = tpu.matmul %1, %24, %cst_15 {dimension_numbers = #tpu.dot_dimension_numbers<[1], [0], [0], [1], [0, 0, 1, 1], [], []>} : vector<128x128xbf16>, vector<128x128xbf16>, vector<128x128xf32> -> vector<128x128xf32>
    %26 = vector.broadcast %2 : vector<128x1xf32> to vector<128x128xf32>
    %27 = arith.mulf %25, %26 : vector<128x128xf32>
    %28 = arith.truncf %27 : vector<128x128xf32> to vector<128x128xbf16>
    %c0_16 = arith.constant 0 : index
    %c0_17 = arith.constant 0 : index
    %29 = vector.load %arg6[%c0_16, %c0_17] : memref<128x128xbf16, #tpu.memory_space<vmem>>, vector<128x128xbf16>
    %cst_18 = arith.constant dense<0.000000e+00> : vector<128x128xf32>
    %30 = tpu.matmul %28, %29, %cst_18 {dimension_numbers = #tpu.dot_dimension_numbers<[1], [0], [0], [1], [0, 0, 1, 1], [], []>} : vector<128x128xbf16>, vector<128x128xbf16>, vector<128x128xf32> -> vector<128x128xf32>
    %c0_19 = arith.constant 0 : index
    %c0_20 = arith.constant 0 : index
    %31 = vector.load %arg7[%c0_19, %c0_20] : memref<1x128xf32, #tpu.memory_space<vmem>>, vector<1x128xf32>
    %32 = vector.broadcast %31 : vector<1x128xf32> to vector<128x128xf32>
    %33 = arith.addf %30, %32 : vector<128x128xf32>
    %cst_21 = arith.constant 0.000000e+00 : f32
    %34 = vector.broadcast %cst_21 : f32 to vector<128x128xf32>
    %35 = arith.maximumf %33, %34 : vector<128x128xf32>
    %36 = arith.truncf %35 : vector<128x128xf32> to vector<128x128xbf16>
    %cst_22 = arith.constant dense<0.000000e+00> : vector<128x128xf32>
    %37 = tpu.matmul %1, %36, %cst_22 {dimension_numbers = #tpu.dot_dimension_numbers<[1], [0], [0], [1], [0, 0, 1, 1], [], []>} : vector<128x128xbf16>, vector<128x128xbf16>, vector<128x128xf32> -> vector<128x128xf32>
    %38 = vector.broadcast %2 : vector<128x1xf32> to vector<128x128xf32>
    %39 = arith.mulf %37, %38 : vector<128x128xf32>
    %40 = arith.truncf %39 : vector<128x128xf32> to vector<128x128xbf16>
    %c0_23 = arith.constant 0 : index
    %c0_24 = arith.constant 0 : index
    %41 = vector.load %arg8[%c0_23, %c0_24] : memref<128x128xbf16, #tpu.memory_space<vmem>>, vector<128x128xbf16>
    %cst_25 = arith.constant dense<0.000000e+00> : vector<128x128xf32>
    %42 = tpu.matmul %40, %41, %cst_25 {dimension_numbers = #tpu.dot_dimension_numbers<[1], [0], [0], [1], [0, 0, 1, 1], [], []>} : vector<128x128xbf16>, vector<128x128xbf16>, vector<128x128xf32> -> vector<128x128xf32>
    %c0_26 = arith.constant 0 : index
    %c0_27 = arith.constant 0 : index
    %43 = vector.load %arg9[%c0_26, %c0_27] : memref<1x128xf32, #tpu.memory_space<vmem>>, vector<1x128xf32>
    %44 = vector.broadcast %43 : vector<1x128xf32> to vector<128x128xf32>
    %45 = arith.addf %42, %44 : vector<128x128xf32>
    %cst_28 = arith.constant 0.000000e+00 : f32
    %46 = vector.broadcast %cst_28 : f32 to vector<128x128xf32>
    %47 = arith.maximumf %45, %46 : vector<128x128xf32>
    %48 = arith.truncf %47 : vector<128x128xf32> to vector<128x128xbf16>
    %c0_29 = arith.constant 0 : index
    %c0_30 = arith.constant 0 : index
    %49 = vector.load %arg10[%c0_29, %c0_30] : memref<128x128xbf16, #tpu.memory_space<vmem>>, vector<128x128xbf16>
    %cst_31 = arith.constant dense<0.000000e+00> : vector<128x128xf32>
    %50 = tpu.matmul %48, %49, %cst_31 {dimension_numbers = #tpu.dot_dimension_numbers<[1], [0], [0], [1], [0, 0, 1, 1], [], []>} : vector<128x128xbf16>, vector<128x128xbf16>, vector<128x128xf32> -> vector<128x128xf32>
    %c0_32 = arith.constant 0 : index
    %c0_33 = arith.constant 0 : index
    %51 = vector.load %arg11[%c0_32, %c0_33] : memref<1x128xf32, #tpu.memory_space<vmem>>, vector<1x128xf32>
    %52 = vector.broadcast %51 : vector<1x128xf32> to vector<128x128xf32>
    %53 = arith.addf %50, %52 : vector<128x128xf32>
    %c0_34 = arith.constant 0 : index
    %c0_35 = arith.constant 0 : index
    %54 = vector.load %arg12[%c0_34, %c0_35] : memref<128x128xf32, #tpu.memory_space<vmem>>, vector<128x128xf32>
    tpu.vector_store %arg12[%c0_34, %c0_35], %53 {strides = array<i32>} : memref<128x128xf32, #tpu.memory_space<vmem>>, vector<128x128xf32>,
    return
  }
}

</mosaic_0001>

<bundles_post_ra>
// kernel: tpu_custom_call.1
= control target key start
LH: loop header
LB: loop body
LE: loop exit
PB: predicated region body
PF: predicated region fallthrough
CT: control target
= control target key end

     0   :  { %17 = vsyncpa [#allocation3], 0  ;;  %s1941_s0 = inlined_call_operand.hbm [shape: s8[128,128], index: 0, kind: input, shape index: {}]   ;;  %s1942_s1 = inlined_call_operand.vmem [shape: f32[128,1], index: 1, kind: input, shape index: {}]   ;;  %s1943_s2 = inlined_call_operand.vmem [shape: bf16[128,128], index: 2, kind: input, shape index: {}]   ;;  %s1944_s3 = inlined_call_operand.vmem [shape: f32[1,128], index: 3, kind: input, shape index: {}]   ;;  %s1945_s4 = inlined_call_operand.vmem [shape: bf16[128,128], index: 4, kind: input, shape index: {}]   ;;  %s1946_s5 = inlined_call_operand.vmem [shape: f32[1,128], index: 5, kind: input, shape index: {}]   ;;  %s1947_s6 = inlined_call_operand.hbm [shape: bf16[128,128], index: 6, kind: input, shape index: {}]   ;;  %s1948_s7 = inlined_call_operand.vmem [shape: f32[1,128], index: 7, kind: input, shape index: {}]   ;;  %s1949_s8 = inlined_call_operand.hbm [shape: bf16[128,128], index: 8, kind: input, shape index: {}]   ;;  %s1950_s9 = inlined_call_operand.vmem [shape: f32[1,128], index: 9, kind: input, shape index: {}]   ;;  %s1951_s10 = inlined_call_operand.hbm [shape: bf16[128,128], index: 10, kind: input, shape index: {}]   ;;  %s1952_s11 = inlined_call_operand.vmem [shape: f32[1,128], index: 11, kind: input, shape index: {}]   ;;  %s1953_s12 = inlined_call_operand.hbm [shape: f32[128,128], index: 12, kind: output, shape index: {}]  }
   0x1   :  { %18 = vsyncpa [#allocation6], 0 }
   0x2   :  { %19 = vsyncpa [#allocation9], 0  ;;  %s48_s23 = sshll.u32 %s1947_s6, 4  ;;  %s49_s23 = int_to_ptr.hbm [resolvable:$true] %s48_s23 }
   0x3   :  { %20 = vsyncpa [#allocation4], 0  ;;  %s1560_s24 = smov [#allocation5]   ;;  %s25_s28 = sshll.u32 %s1941_s0, 4  ;;  %s26_s28 = int_to_ptr.hbm [resolvable:$true] %s25_s28 }
   0x4   :  { %s50_s25 = sshll.u32 %s1560_s24, 4  ;;  %s1561_s29 = smov 64   ;;  %s51_s25 = int_to_ptr.vmem [resolvable:$true] %s50_s25 }
   0x5   :  { %s1562_s30 = smov 4   ;;  %s1563_s13 = smov [#allocation2]  }
   0x6   :  { %56 = dma.hbm_to_vmem [thread:$0]  %s49_s23, 1024, %s51_s25, [#allocation6], %s1561_s29, %s1561_s29, %s1562_s30  }
   0x7   :  { %s27_s14 = sshll.u32 %s1563_s13, 4  ;;  %s1564_s15 = smov 128   ;;  %s28_s14 = int_to_ptr.vmem [resolvable:$true] %s27_s14 }
   0x8   :  { %s1565_s16 = smov 8   ;;  %s63_s18 = sshll.u32 %s1949_s8, 4  ;;  %s64_s18 = int_to_ptr.hbm [resolvable:$true] %s63_s18 }
   0x9   :  { %33 = dma.hbm_to_vmem [thread:$0]  %s26_s28, 512, %s28_s14, [#allocation3], %s1564_s15, %s1564_s15, %s1565_s16  }
   0xa   :  { %s1566_s19 = smov [#allocation7]   ;;  %s78_s22 = sshll.u32 %s1951_s10, 4  ;;  %s79_s22 = int_to_ptr.hbm [resolvable:$true] %s78_s22 }
   0xb   :  { %s65_s0 = sshll.u32 %s1566_s19, 4  ;;  %s1567_s23 = smov [#allocation8]   ;;  %s66_s0 = int_to_ptr.vmem [resolvable:$true] %s65_s0 }
   0xc   :  { %71 = dma.hbm_to_vmem [thread:$0]  %s64_s18, 1024, %s66_s0, [#allocation6], %s1561_s29, %s1561_s29, %s1562_s30  }
   0xd   :  { %s80_s24 = sshll.u32 %s1567_s23, 4  ;;  %s81_s24 = int_to_ptr.vmem [resolvable:$true] %s80_s24 }
   0xe   :  { %86 = dma.hbm_to_vmem [thread:$0]  %s79_s22, 1024, %s81_s24, [#allocation9], %s1561_s29, %s1561_s29, %s1562_s30  }
   0xf   :  { %1552 = dma.done.wait [#allocation3], 512  }
  0x10   :  { %1553 = vsyncadd [#allocation3], 4294966784 }
  0x11   :  { %1554 = dma.done.wait [#allocation6], 2048  }
  0x12   :  { %1555 = vsyncadd [#allocation6], 4294965248 }
  0x13   :  { %1556 = dma.done.wait [#allocation9], 1024  }
  0x14   :  { %1557 = vsyncadd [#allocation9], 4294966272  ;;  %v1568_v0 = vmov 0   ;;  %v1381_v1 = vld [vmem:[%s1943_s2 + $0x38] sm:$0xff]  ;;  %v163_v2 = vld [vmem:[%s1942_s1 + $0x70] sm:$0xff] }
  0x15   :  { %1424 = vset.pattern.permute.xlu0 %v1568_v0  ;;  %1426 = vset.pattern.permute.xlu2 %v1568_v0  ;;  %v1380_v3 = vld [vmem:[%s1943_s2 + $0x30] sm:$0xff]  ;;  %v161_v4 = vld [vmem:[%s1942_s1 + $0x60] sm:$0xff]  ;;  %v1379_v6 = vld [vmem:[%s1943_s2 + $0x28] sm:$0xff] }
  0x16   :  { %1425 = vset.pattern.permute.xlu1 %v1568_v0  ;;  %229 = vmatpush.bf16.msra.mxu0 %v1381_v1  ;;  %v159_v5 = vld [vmem:[%s1942_s1 + $0x50] sm:$0xff]  ;;  %v164_v7 = vld [vmem:[%s1942_s1 + $0x78] sm:$0xff]  ;;  %v1378_v8 = vld [vmem:[%s1943_s2 + $0x20] sm:$0xff] }
  0x17   :  { %350 = vperm.xlu0 %1424, %v163_v2   ;;  %340 = vperm.xlu1 %1425, %v161_v4   ;;  %v162_v9 = vld [vmem:[%s1942_s1 + $0x68] sm:$0xff]  ;;  %v160_v10 = vld [vmem:[%s1942_s1 + $0x58] sm:$0xff]  ;;  %v157_v12 = vld [vmem:[%s1942_s1 + $0x40] sm:$0xff] }
  0x18   :  { %330 = vperm.xlu2 %1426, %v159_v5   ;;  %v1377_v11 = vld [vmem:[%s1943_s2 + $0x18] sm:$0xff]  ;;  %v1376_v13 = vld [vmem:[%s1943_s2 + $0x10] sm:$0xff]  ;;  %v105_v14 = vld [vmem:[#allocation2] sm:$0xff] }
  0x19   :  { %v158_v15 = vld [vmem:[%s1942_s1 + $0x48] sm:$0xff]  ;;  %v155_v16 = vld [vmem:[%s1942_s1 + $0x30] sm:$0xff]  ;;  %v109_v17 = vunpack.c.0.s8 %v105_v14  ;;  %v110_v18 = vunpack.c.1.s8 %v105_v14  ;;  %v156_v20 = vld [vmem:[%s1942_s1 + $0x38] sm:$0xff]  ;;  %v111_v30 = vunpack.c.2.s8 %v105_v14  ;;  %v112_v31 = vunpack.c.3.s8 %v105_v14 }
  0x1a   :  { %230 = vmatpush.bf16.msra.mxu0 %v1380_v3  ;;  %v1375_v19 = vld [vmem:[%s1943_s2 + $0x8] sm:$0xff]  ;;  %v1374_v23 = vld [vmem:[%s1943_s2] sm:$0xff]  ;;  %v151_v27 = vld [vmem:[%s1942_s1 + $0x10] sm:$0xff] }
  0x1b   :  { %v125_v21 = vcvt.s32.f32 %v109_v17  ;;  %v126_v22 = vcvt.s32.f32 %v110_v18  ;;  %v154_v24 = vld [vmem:[%s1942_s1 + $0x28] sm:$0xff]  ;;  %v153_v25 = vld [vmem:[%s1942_s1 + $0x20] sm:$0xff]  ;;  %v152_v28 = vld [vmem:[%s1942_s1 + $0x18] sm:$0xff]  ;;  %v127_v33 = vcvt.s32.f32 %v111_v30  ;;  %v128_v34 = vcvt.s32.f32 %v112_v31 }
  0x1c   :  { %v149_v29 = vld [vmem:[%s1942_s1] sm:$0xff]  ;;  %v150_v32 = vld [vmem:[%s1942_s1 + $0x8] sm:$0xff]  ;;  %v107_v47 = vld [vmem:[#allocation2 + $0x10] sm:$0xff] }
  0x1d   :  { %v1710_v26 = vpack.c.bf16 %v126_v22, %v125_v21  ;;  %v1725_v35 = vpack.c.bf16 %v128_v34, %v127_v33  ;;  %v106_v36 = vld [vmem:[#allocation2 + $0x8] sm:$0xff]  ;;  %v117_v48 = vunpack.c.0.s8 %v107_v47  ;;  %v118_v49 = vunpack.c.1.s8 %v107_v47  ;;  %v108_v58 = vld [vmem:[#allocation2 + $0x18] sm:$0xff]  ;;  %v1774_v30 = vld [vmem:[%s1944_s3] ss:$0 sm:$0xff]  ;;  %s1199_s3 = sshll.u32 %s1953_s12, 4  ;;  %s1200_s3 = int_to_ptr.hbm [resolvable:$true] %s1199_s3 }
  0x1e   :  { %231 = vmatpush.bf16.msra.mxu0 %v1379_v6  ;;  %v113_v37 = vunpack.c.0.s8 %v106_v36  ;;  %v114_v38 = vunpack.c.1.s8 %v106_v36  ;;  %v115_v42 = vunpack.c.2.s8 %v106_v36  ;;  %v116_v43 = vunpack.c.3.s8 %v106_v36 }
  0x1f   :  { %355 = vperm.xlu0 %1424, %v164_v7   ;;  %345 = vperm.xlu1 %1425, %v162_v9   ;;  %v133_v50 = vcvt.s32.f32 %v117_v48  ;;  %v134_v51 = vcvt.s32.f32 %v118_v49  ;;  %v119_v53 = vunpack.c.2.s8 %v107_v47  ;;  %v120_v54 = vunpack.c.3.s8 %v107_v47 }
  0x20   :  { %335 = vperm.xlu2 %1426, %v160_v10   ;;  %v129_v39 = vcvt.s32.f32 %v113_v37  ;;  %v130_v40 = vcvt.s32.f32 %v114_v38  ;;  %v131_v44 = vcvt.s32.f32 %v115_v42  ;;  %v132_v45 = vcvt.s32.f32 %v116_v43 }
  0x21   :  { %v1734_v52 = vpack.c.bf16 %v134_v51, %v133_v50  ;;  %v135_v55 = vcvt.s32.f32 %v119_v53  ;;  %v136_v56 = vcvt.s32.f32 %v120_v54  ;;  %v121_v59 = vunpack.c.0.s8 %v108_v58 }
  0x22   :  { %232 = vmatpush.bf16.msra.mxu0 %v1378_v8  ;;  %v1728_v41 = vpack.c.bf16 %v130_v40, %v129_v39  ;;  %v1731_v46 = vpack.c.bf16 %v132_v45, %v131_v44  ;;  %v122_v60 = vunpack.c.1.s8 %v108_v58  ;;  %v123_v0 = vunpack.c.2.s8 %v108_v58 }
  0x23   :  { %v1737_v57 = vpack.c.bf16 %v136_v56, %v135_v55  ;;  %v137_v61 = vcvt.s32.f32 %v121_v59  ;;  %v124_v1 = vunpack.c.3.s8 %v108_v58 }
  0x24   :  { %v138_v62 = vcvt.s32.f32 %v122_v60  ;;  %v139_v2 = vcvt.s32.f32 %v123_v0 }
  0x25   :  { %v140_v3 = vcvt.s32.f32 %v124_v1 }
  0x26   :  { %233 = vmatpush.bf16.msra.mxu0 %v1377_v11  ;;  %v1740_v63 = vpack.c.bf16 %v138_v62, %v137_v61 }
  0x27   :  { %320 = vperm.xlu0 %1424, %v157_v12   ;;  %325 = vperm.xlu1 %1425, %v158_v15   ;;  %v1743_v4 = vpack.c.bf16 %v140_v3, %v139_v2 }
  0x28   :  { %310 = vperm.xlu2 %1426, %v155_v16  }
  0x2a   :  { %234 = vmatpush.bf16.msra.mxu0 %v1376_v13 }
  0x2e   :  { %235 = vmatpush.bf16.msra.mxu0 %v1375_v19 }
  0x2f   :  { %315 = vperm.xlu0 %1424, %v156_v20   ;;  %300 = vperm.xlu1 %1425, %v153_v25  }
  0x30   :  { %305 = vperm.xlu2 %1426, %v154_v24  }
  0x32   :  { %236 = vmatpush.bf16.msra.mxu0 %v1374_v23 }
  0x35   :  { %237 = vmatmul.bf16.vlgmr.msra.gmra.mxu0 %v1710_v26 }
  0x37   :  { %290 = vperm.xlu0 %1424, %v151_v27   ;;  %295 = vperm.xlu1 %1425, %v152_v28  }
  0x38   :  { %280 = vperm.xlu2 %1426, %v149_v29  }
  0x3f   :  { %285 = vperm.xlu0 %1424, %v150_v32  }
  0x45   :  { %242 = vmatmul.bf16.gmra.mxu0 %v1725_v35 }
  0x55   :  { %247 = vmatmul.bf16.gmra.mxu0 %v1728_v41 }
  0x65   :  { %252 = vmatmul.bf16.gmra.mxu0 %v1731_v46 }
  0x72   :  { %v1760_v21 = vpop.permute.xlu2 %330 }
  0x75   :  { %257 = vmatmul.bf16.gmra.mxu0 %v1734_v52 }
  0x7a   :  { %v1766_v25 = vpop.permute.xlu2 %335 }
  0x82   :  { %v1782_v38 = vpop.permute.xlu2 %310 }
  0x85   :  { %262 = vmatmul.bf16.gmra.mxu0 %v1737_v57 }
  0x89   :  { %v1754_v17 = vpop.permute.xlu0 %350  ;;  %v1756_v18 = vpop.permute.xlu1 %340 }
  0x8a   :  { %v1799_v0 = vpop.permute.xlu2 %305 }
  0x91   :  { %v1758_v20 = vpop.permute.xlu0 %355  ;;  %v1762_v23 = vpop.permute.xlu1 %345 }
  0x95   :  { %267 = vmatmul.bf16.gmra.mxu0 %v1740_v63 }
  0x99   :  { %v1764_v24 = vpop.permute.xlu0 %320  ;;  %v1768_v28 = vpop.permute.xlu1 %325 }
  0xa1   :  { %v1777_v32 = vpop.permute.xlu0 %315  ;;  %v1789_v48 = vpop.permute.xlu1 %300 }
  0xa5   :  { %272 = vmatmul.bf16.gmra.mxu0 %v1743_v4 }
  0xa9   :  { %v1795_v58 = vpop.permute.xlu0 %290 }
  0xb2   :  { %v1746_v5 = vpop.f32.mrf.mxu0 }
  0xba   :  { %v1748_v6 = vpop.f32.mrf.mxu0 }
  0xc2   :  { %v1750_v7 = vpop.f32.mrf.mxu0 }
  0xca   :  { %v1752_v8 = vpop.f32.mrf.mxu0 }
  0xd2   :  { %v248_v9 = vpop.f32.mrf.mxu0 }
  0xda   :  { %v250_v10 = vpop.f32.mrf.mxu0 }
  0xe2   :  { %v253_v11 = vpop.f32.mrf.mxu0 }
  0xe3   :  { %v364_v1 = vmul.f32 %v1782_v38, %v253_v11 }
  0xea   :  { %v255_v12 = vpop.f32.mrf.mxu0 }
  0xeb   :  { %v365_v59 = vmul.f32 %v1777_v32, %v255_v12  ;;  %v362_v12 = vmul.f32 %v1789_v48, %v248_v9  ;;  %v1817_v9 = vpop.permute.xlu2 %280 }
  0xf2   :  { %v258_v13 = vpop.f32.mrf.mxu0 }
  0xf3   :  { %v366_v54 = vmul.f32 %v1764_v24, %v258_v13  ;;  %v363_v13 = vmul.f32 %v1799_v0, %v250_v10  ;;  %v1812_v10 = vpop.permute.xlu0 %285 }
  0xf5   :  { %v386_v2 = vadd.f32 %v1774_v30, %v366_v54 }
  0xfa   :  { %v260_v14 = vpop.f32.mrf.mxu0 }
  0xfb   :  { %v367_v49 = vmul.f32 %v1768_v28, %v260_v14  ;;  %v385_v14 = vadd.f32 %v1774_v30, %v365_v59  ;;  %v1386_v59 = vld [vmem:[%s1945_s4 + $0x20] sm:$0xff] }
  0xfd   :  { %v387_v60 = vadd.f32 %v1774_v30, %v367_v49 }
 0x102   :  { %v263_v15 = vpop.f32.mrf.mxu0 }
 0x103   :  { %v368_v43 = vmul.f32 %v1760_v21, %v263_v15  ;;  %v403_v15 = vmax.f32 %v387_v60, 0.0  ;;  %v1385_v60 = vld [vmem:[%s1945_s4 + $0x18] sm:$0xff] }
 0x105   :  { %v388_v55 = vadd.f32 %v1774_v30, %v368_v43  ;;  %v358_v43 = vmul.f32 %v1817_v9, %v1746_v5  ;;  %v1389_v5 = vld [vmem:[%s1945_s4 + $0x38] sm:$0xff] }
 0x106   :  { %559 = vmatpush.bf16.msra.mxu2 %v1389_v5 }
 0x107   :  { %v404_v3 = vmax.f32 %v388_v55, 0.0 }
 0x10a   :  { %v265_v16 = vpop.f32.mrf.mxu0 }
 0x10b   :  { %v369_v39 = vmul.f32 %v1766_v25, %v265_v16 }
 0x10d   :  { %v389_v50 = vadd.f32 %v1774_v30, %v369_v39  ;;  %v359_v39 = vmul.f32 %v1812_v10, %v1748_v6 }
 0x10f   :  { %v405_v61 = vmax.f32 %v389_v50, 0.0  ;;  %v378_v50 = vadd.f32 %v1774_v30, %v358_v43 }
 0x111   :  { %v415_v16 = vpack.c.bf16 %v405_v61, %v404_v3  ;;  %v394_v54 = vmax.f32 %v378_v50, 0.0  ;;  %v1384_v61 = vld [vmem:[%s1945_s4 + $0x10] sm:$0xff] }
 0x112   :  { %v268_v19 = vpop.f32.mrf.mxu0 }
 0x113   :  { %v370_v34 = vmul.f32 %v1756_v18, %v268_v19  ;;  %v1805_v19 = vpop.permute.xlu1 %295 }
 0x114   :  { %v361_v11 = vmul.f32 %v1805_v19, %v1752_v8 }
 0x115   :  { %v390_v44 = vadd.f32 %v1774_v30, %v370_v34  ;;  %v360_v34 = vmul.f32 %v1795_v58, %v1750_v7  ;;  %v379_v7 = vadd.f32 %v1774_v30, %v359_v39 }
 0x116   :  { %v381_v8 = vadd.f32 %v1774_v30, %v361_v11 }
 0x117   :  { %v406_v56 = vmax.f32 %v390_v44, 0.0  ;;  %v380_v44 = vadd.f32 %v1774_v30, %v360_v34 }
 0x118   :  { %v397_v49 = vmax.f32 %v381_v8, 0.0 }
 0x11a   :  { %v270_v22 = vpop.f32.mrf.mxu0 }
 0x11b   :  { %v371_v31 = vmul.f32 %v1762_v23, %v270_v22  ;;  %v384_v22 = vadd.f32 %v1774_v30, %v364_v1  ;;  %v1382_v1 = vld [vmem:[%s1945_s4] sm:$0xff] }
 0x11d   :  { %v391_v40 = vadd.f32 %v1774_v30, %v371_v31 }
 0x11f   :  { %v407_v51 = vmax.f32 %v391_v40, 0.0 }
 0x121   :  { %v416_v62 = vpack.c.bf16 %v407_v51, %v406_v56  ;;  %v396_v51 = vmax.f32 %v380_v44, 0.0  ;;  %v1387_v56 = vld [vmem:[%s1945_s4 + $0x28] sm:$0xff] }
 0x122   :  { %v273_v27 = vpop.f32.mrf.mxu0 }
 0x123   :  { %v372_v29 = vmul.f32 %v1754_v17, %v273_v27  ;;  %v402_v27 = vmax.f32 %v386_v2, 0.0  ;;  %v411_v6 = vpack.c.bf16 %v397_v49, %v396_v51 }
 0x125   :  { %v392_v37 = vadd.f32 %v1774_v30, %v372_v29  ;;  %v383_v29 = vadd.f32 %v1774_v30, %v363_v13  ;;  %v414_v31 = vpack.c.bf16 %v403_v15, %v402_v27 }
 0x127   :  { %v408_v45 = vmax.f32 %v392_v37, 0.0  ;;  %v400_v37 = vmax.f32 %v384_v22, 0.0 }
 0x12a   :  { %v275_v33 = vpop.f32.mrf.mxu0 }
 0x12b   :  { %v373_v36 = vmul.f32 %v1758_v20, %v275_v33  ;;  %v401_v33 = vmax.f32 %v385_v14, 0.0 }
 0x12d   :  { %v393_v42 = vadd.f32 %v1774_v30, %v373_v36  ;;  %v382_v36 = vadd.f32 %v1774_v30, %v362_v12  ;;  %v413_v40 = vpack.c.bf16 %v401_v33, %v400_v37  ;;  %v1388_v30 = vld [vmem:[%s1945_s4 + $0x30] sm:$0xff] }
 0x12e   :  { %560 = vmatpush.bf16.msra.mxu2 %v1388_v30 }
 0x12f   :  { %v409_v47 = vmax.f32 %v393_v42, 0.0  ;;  %v399_v42 = vmax.f32 %v383_v29, 0.0 }
 0x131   :  { %v417_v53 = vpack.c.bf16 %v409_v47, %v408_v45  ;;  %v398_v45 = vmax.f32 %v382_v36, 0.0 }
 0x132   :  { %561 = vmatpush.bf16.msra.mxu2 %v1387_v56 }
 0x133   :  { %418 = vmatpush.bf16.msra.mxu1 %v417_v53  ;;  %v412_v47 = vpack.c.bf16 %v399_v42, %v398_v45  ;;  %v395_v53 = vmax.f32 %v379_v7, 0.0 }
 0x135   :  { %v410_v55 = vpack.c.bf16 %v395_v53, %v394_v54 }
 0x136   :  { %562 = vmatpush.bf16.msra.mxu2 %v1386_v59 }
 0x137   :  { %419 = vmatpush.bf16.msra.mxu1 %v416_v62  ;;  %v1383_v62 = vld [vmem:[%s1945_s4 + $0x8] sm:$0xff] }
 0x13a   :  { %563 = vmatpush.bf16.msra.mxu2 %v1385_v60 }
 0x13b   :  { %420 = vmatpush.bf16.msra.mxu1 %v415_v16 }
 0x13e   :  { %564 = vmatpush.bf16.msra.mxu2 %v1384_v61 }
 0x13f   :  { %421 = vmatpush.bf16.msra.mxu1 %v414_v31 }
 0x142   :  { %565 = vmatpush.bf16.msra.mxu2 %v1383_v62 }
 0x143   :  { %422 = vmatpush.bf16.msra.mxu1 %v413_v40 }
 0x146   :  { %566 = vmatpush.bf16.msra.mxu2 %v1382_v1 }
 0x147   :  { %423 = vmatpush.bf16.msra.mxu1 %v412_v47 }
 0x14b   :  { %424 = vmatpush.bf16.msra.mxu1 %v411_v6 }
 0x14f   :  { %425 = vmatpush.bf16.msra.mxu1 %v410_v55 }
 0x152   :  { %426 = vmatmul.bf16.vlgmr.msra.gmra.mxu1 %v1710_v26 }
 0x162   :  { %431 = vmatmul.bf16.gmra.mxu1 %v1725_v35 }
 0x172   :  { %436 = vmatmul.bf16.gmra.mxu1 %v1728_v41 }
 0x182   :  { %441 = vmatmul.bf16.gmra.mxu1 %v1731_v46 }
 0x192   :  { %446 = vmatmul.bf16.gmra.mxu1 %v1734_v52 }
 0x1a2   :  { %451 = vmatmul.bf16.gmra.mxu1 %v1737_v57 }
 0x1b2   :  { %456 = vmatmul.bf16.gmra.mxu1 %v1740_v63 }
 0x1c2   :  { %461 = vmatmul.bf16.gmra.mxu1 %v1743_v4 }
 0x1cf   :  { %v427_v2 = vpop.f32.mrf.mxu1 }
 0x1d0   :  { %v467_v13 = vmul.f32 %v427_v2, %v1817_v9 }
 0x1d7   :  { %v429_v3 = vpop.f32.mrf.mxu1 }
 0x1d8   :  { %v468_v14 = vmul.f32 %v429_v3, %v1812_v10 }
 0x1da   :  { %v483_v15 = vpack.c.bf16 %v468_v14, %v467_v13 }
 0x1dc   :  { %567 = vmatmul.bf16.vlgmr.msra.gmra.mxu2 %v483_v15 }
 0x1df   :  { %v432_v16 = vpop.f32.mrf.mxu1 }
 0x1e0   :  { %v469_v22 = vmul.f32 %v432_v16, %v1795_v58 }
 0x1e7   :  { %v434_v12 = vpop.f32.mrf.mxu1 }
 0x1e8   :  { %v470_v27 = vmul.f32 %v434_v12, %v1805_v19 }
 0x1ea   :  { %v484_v11 = vpack.c.bf16 %v470_v27, %v469_v22 }
 0x1ec   :  { %572 = vmatmul.bf16.gmra.mxu2 %v484_v11 }
 0x1ef   :  { %v437_v29 = vpop.f32.mrf.mxu1 }
 0x1f0   :  { %v471_v33 = vmul.f32 %v437_v29, %v1789_v48 }
 0x1f7   :  { %v439_v31 = vpop.f32.mrf.mxu1 }
 0x1f8   :  { %v472_v34 = vmul.f32 %v439_v31, %v1799_v0 }
 0x1fa   :  { %v485_v36 = vpack.c.bf16 %v472_v34, %v471_v33 }
 0x1fc   :  { %577 = vmatmul.bf16.gmra.mxu2 %v485_v36 }
 0x1ff   :  { %v442_v37 = vpop.f32.mrf.mxu1 }
 0x200   :  { %v473_v8 = vmul.f32 %v442_v37, %v1782_v38  ;;  %v1428_v37 = vld [vmem:[%s1946_s5] ss:$0 sm:$0xff] }
 0x207   :  { %v444_v39 = vpop.f32.mrf.mxu1 }
 0x208   :  { %v474_v40 = vmul.f32 %v444_v39, %v1777_v32 }
 0x20a   :  { %v486_v42 = vpack.c.bf16 %v474_v40, %v473_v8 }
 0x20c   :  { %582 = vmatmul.bf16.gmra.mxu2 %v486_v42 }
 0x20f   :  { %v447_v43 = vpop.f32.mrf.mxu1 }
 0x210   :  { %v475_v45 = vmul.f32 %v447_v43, %v1764_v24 }
 0x217   :  { %v449_v44 = vpop.f32.mrf.mxu1 }
 0x218   :  { %v476_v7 = vmul.f32 %v449_v44, %v1768_v28 }
 0x21a   :  { %v487_v47 = vpack.c.bf16 %v476_v7, %v475_v45 }
 0x21c   :  { %587 = vmatmul.bf16.gmra.mxu2 %v487_v47 }
 0x21f   :  { %v452_v49 = vpop.f32.mrf.mxu1 }
 0x220   :  { %v477_v51 = vmul.f32 %v452_v49, %v1760_v21 }
 0x227   :  { %v454_v50 = vpop.f32.mrf.mxu1 }
 0x228   :  { %v478_v6 = vmul.f32 %v454_v50, %v1766_v25 }
 0x22a   :  { %v488_v53 = vpack.c.bf16 %v478_v6, %v477_v51 }
 0x22c   :  { %592 = vmatmul.bf16.gmra.mxu2 %v488_v53 }
 0x22f   :  { %v457_v54 = vpop.f32.mrf.mxu1 }
 0x230   :  { %v479_v5 = vmul.f32 %v457_v54, %v1756_v18 }
 0x237   :  { %v459_v55 = vpop.f32.mrf.mxu1 }
 0x238   :  { %v480_v30 = vmul.f32 %v459_v55, %v1762_v23 }
 0x23a   :  { %v489_v56 = vpack.c.bf16 %v480_v30, %v479_v5 }
 0x23c   :  { %597 = vmatmul.bf16.gmra.mxu2 %v489_v56 }
 0x23f   :  { %v462_v59 = vpop.f32.mrf.mxu1 }
 0x240   :  { %v481_v61 = vmul.f32 %v462_v59, %v1754_v17 }
 0x247   :  { %v464_v60 = vpop.f32.mrf.mxu1 }
 0x248   :  { %v482_v62 = vmul.f32 %v464_v60, %v1758_v20 }
 0x24a   :  { %v490_v1 = vpack.c.bf16 %v482_v62, %v481_v61 }
 0x24c   :  { %602 = vmatmul.bf16.gmra.mxu2 %v490_v1 }
 0x25f   :  { %v568_v2 = vpop.f32.mrf.mxu2 }
 0x267   :  { %v570_v3 = vpop.f32.mrf.mxu2 }
 0x26f   :  { %v573_v13 = vpop.f32.mrf.mxu2 }
 0x277   :  { %v575_v14 = vpop.f32.mrf.mxu2 }
 0x27f   :  { %v578_v15 = vpop.f32.mrf.mxu2 }
 0x287   :  { %v580_v16 = vpop.f32.mrf.mxu2 }
 0x288   :  { %v581_v62 = vadd.f32 %v1428_v37, %v580_v16 }
 0x28f   :  { %v583_v12 = vpop.f32.mrf.mxu2 }
 0x290   :  { %v584_v60 = vadd.f32 %v1428_v37, %v583_v12 }
 0x297   :  { %v585_v22 = vpop.f32.mrf.mxu2 }
 0x298   :  { %v586_v30 = vadd.f32 %v1428_v37, %v585_v22 }
 0x29a   :  { %v615_v1 = vmax.f32 %v586_v30, 0.0 }
 0x29f   :  { %v588_v27 = vpop.f32.mrf.mxu2 }
 0x2a0   :  { %v589_v55 = vadd.f32 %v1428_v37, %v588_v27  ;;  %v571_v27 = vadd.f32 %v1428_v37, %v570_v3  ;;  %v1397_v3 = vld [vmem:[#allocation5 + $0x38] sm:$0xff] }
 0x2a1   :  { %773 = vmatpush.bf16.msrb.mxu0 %v1397_v3 }
 0x2a2   :  { %v616_v61 = vmax.f32 %v589_v55, 0.0  ;;  %v609_v12 = vmax.f32 %v571_v27, 0.0 }
 0x2a7   :  { %v590_v11 = vpop.f32.mrf.mxu2 }
 0x2a8   :  { %v591_v6 = vadd.f32 %v1428_v37, %v590_v11 }
 0x2aa   :  { %v617_v56 = vmax.f32 %v591_v6, 0.0 }
 0x2af   :  { %v593_v29 = vpop.f32.mrf.mxu2 }
 0x2b0   :  { %v594_v50 = vadd.f32 %v1428_v37, %v593_v29  ;;  %v576_v29 = vadd.f32 %v1428_v37, %v575_v14  ;;  %v1394_v14 = vld [vmem:[#allocation5 + $0x20] sm:$0xff] }
 0x2b2   :  { %v618_v5 = vmax.f32 %v594_v50, 0.0 }
 0x2b7   :  { %v595_v31 = vpop.f32.mrf.mxu2 }
 0x2b8   :  { %v596_v7 = vadd.f32 %v1428_v37, %v595_v31  ;;  %v628_v31 = vpack.c.bf16 %v617_v56, %v616_v61 }
 0x2ba   :  { %v619_v53 = vmax.f32 %v596_v7, 0.0  ;;  %v1391_v7 = vld [vmem:[#allocation5 + $0x8] sm:$0xff] }
 0x2bc   :  { %v629_v59 = vpack.c.bf16 %v619_v53, %v618_v5 }
 0x2bf   :  { %v598_v33 = vpop.f32.mrf.mxu2 }
 0x2c0   :  { %v599_v43 = vadd.f32 %v1428_v37, %v598_v33  ;;  %v579_v33 = vadd.f32 %v1428_v37, %v578_v15  ;;  %v1393_v15 = vld [vmem:[#allocation5 + $0x18] sm:$0xff] }
 0x2c2   :  { %v620_v51 = vmax.f32 %v599_v43, 0.0 }
 0x2c7   :  { %v600_v34 = vpop.f32.mrf.mxu2 }
 0x2c8   :  { %v601_v40 = vadd.f32 %v1428_v37, %v600_v34  ;;  %v614_v34 = vmax.f32 %v584_v60, 0.0 }
 0x2ca   :  { %v621_v47 = vmax.f32 %v601_v40, 0.0  ;;  %v627_v11 = vpack.c.bf16 %v615_v1, %v614_v34  ;;  %v611_v40 = vmax.f32 %v576_v29, 0.0 }
 0x2cc   :  { %v630_v54 = vpack.c.bf16 %v621_v47, %v620_v51  ;;  %v1390_v47 = vld [vmem:[#allocation5] sm:$0xff] }
 0x2cf   :  { %v603_v36 = vpop.f32.mrf.mxu2 }
 0x2d0   :  { %v604_v39 = vadd.f32 %v1428_v37, %v603_v36  ;;  %v613_v36 = vmax.f32 %v581_v62, 0.0 }
 0x2d2   :  { %v622_v44 = vmax.f32 %v604_v39, 0.0  ;;  %v574_v39 = vadd.f32 %v1428_v37, %v573_v13  ;;  %v1395_v13 = vld [vmem:[#allocation5 + $0x28] sm:$0xff] }
 0x2d4   :  { %v610_v43 = vmax.f32 %v574_v39, 0.0 }
 0x2d7   :  { %v605_v8 = vpop.f32.mrf.mxu2 }
 0x2d8   :  { %v606_v42 = vadd.f32 %v1428_v37, %v605_v8  ;;  %v612_v8 = vmax.f32 %v579_v33, 0.0 }
 0x2da   :  { %v623_v45 = vmax.f32 %v606_v42, 0.0  ;;  %v626_v22 = vpack.c.bf16 %v613_v36, %v612_v8  ;;  %v569_v42 = vadd.f32 %v1428_v37, %v568_v2  ;;  %v1396_v2 = vld [vmem:[#allocation5 + $0x30] sm:$0xff] }
 0x2db   :  { %774 = vmatpush.bf16.msrb.mxu0 %v1396_v2  ;;  %v1392_v37 = vld [vmem:[#allocation5 + $0x10] sm:$0xff] }
 0x2dc   :  { %v631_v49 = vpack.c.bf16 %v623_v45, %v622_v44  ;;  %v625_v44 = vpack.c.bf16 %v611_v40, %v610_v43  ;;  %v608_v16 = vmax.f32 %v569_v42, 0.0 }
 0x2de   :  { %632 = vmatpush.bf16.msra.mxu3 %v631_v49  ;;  %v624_v45 = vpack.c.bf16 %v609_v12, %v608_v16 }
 0x2df   :  { %775 = vmatpush.bf16.msrb.mxu0 %v1395_v13 }
 0x2e2   :  { %633 = vmatpush.bf16.msra.mxu3 %v630_v54 }
 0x2e3   :  { %776 = vmatpush.bf16.msrb.mxu0 %v1394_v14 }
 0x2e6   :  { %634 = vmatpush.bf16.msra.mxu3 %v629_v59 }
 0x2e7   :  { %777 = vmatpush.bf16.msrb.mxu0 %v1393_v15 }
 0x2ea   :  { %635 = vmatpush.bf16.msra.mxu3 %v628_v31 }
 0x2eb   :  { %778 = vmatpush.bf16.msrb.mxu0 %v1392_v37 }
 0x2ee   :  { %636 = vmatpush.bf16.msra.mxu3 %v627_v11 }
 0x2ef   :  { %779 = vmatpush.bf16.msrb.mxu0 %v1391_v7 }
 0x2f2   :  { %637 = vmatpush.bf16.msra.mxu3 %v626_v22 }
 0x2f3   :  { %780 = vmatpush.bf16.msrb.mxu0 %v1390_v47 }
 0x2f6   :  { %638 = vmatpush.bf16.msra.mxu3 %v625_v44 }
 0x2fa   :  { %639 = vmatpush.bf16.msra.mxu3 %v624_v45 }
 0x2fd   :  { %640 = vmatmul.bf16.vlgmr.msra.gmra.mxu3 %v1710_v26 }
 0x30d   :  { %645 = vmatmul.bf16.gmra.mxu3 %v1725_v35 }
 0x31d   :  { %650 = vmatmul.bf16.gmra.mxu3 %v1728_v41 }
 0x32d   :  { %655 = vmatmul.bf16.gmra.mxu3 %v1731_v46 }
 0x33d   :  { %660 = vmatmul.bf16.gmra.mxu3 %v1734_v52 }
 0x34d   :  { %665 = vmatmul.bf16.gmra.mxu3 %v1737_v57 }
 0x35d   :  { %670 = vmatmul.bf16.gmra.mxu3 %v1740_v63 }
 0x36d   :  { %675 = vmatmul.bf16.gmra.mxu3 %v1743_v4 }
 0x380   :  { %v641_v49 = vpop.f32.mrf.mxu3 }
 0x381   :  { %v681_v51 = vmul.f32 %v641_v49, %v1817_v9 }
 0x388   :  { %v643_v50 = vpop.f32.mrf.mxu3 }
 0x389   :  { %v682_v6 = vmul.f32 %v643_v50, %v1812_v10  ;;  %v1429_v50 = vld [vmem:[%s1948_s7] ss:$0 sm:$0xff] }
 0x38b   :  { %v697_v53 = vpack.c.bf16 %v682_v6, %v681_v51 }
 0x38d   :  { %781 = vmatmul.bf16.vlgmr.msrb.gmra.mxu0 %v697_v53 }
 0x390   :  { %v646_v54 = vpop.f32.mrf.mxu3 }
 0x391   :  { %v683_v5 = vmul.f32 %v646_v54, %v1795_v58 }
 0x398   :  { %v648_v55 = vpop.f32.mrf.mxu3 }
 0x399   :  { %v684_v30 = vmul.f32 %v648_v55, %v1805_v19 }
 0x39b   :  { %v698_v56 = vpack.c.bf16 %v684_v30, %v683_v5 }
 0x39d   :  { %786 = vmatmul.bf16.gmra.mxu0 %v698_v56 }
 0x3a0   :  { %v651_v59 = vpop.f32.mrf.mxu3 }
 0x3a1   :  { %v685_v61 = vmul.f32 %v651_v59, %v1789_v48 }
 0x3a8   :  { %v653_v60 = vpop.f32.mrf.mxu3 }
 0x3a9   :  { %v686_v62 = vmul.f32 %v653_v60, %v1799_v0 }
 0x3ab   :  { %v699_v1 = vpack.c.bf16 %v686_v62, %v685_v61 }
 0x3ad   :  { %791 = vmatmul.bf16.gmra.mxu0 %v699_v1 }
 0x3b0   :  { %v656_v31 = vpop.f32.mrf.mxu3 }
 0x3b1   :  { %v687_v34 = vmul.f32 %v656_v31, %v1782_v38 }
 0x3b8   :  { %v658_v33 = vpop.f32.mrf.mxu3 }
 0x3b9   :  { %v688_v29 = vmul.f32 %v658_v33, %v1777_v32 }
 0x3bb   :  { %v700_v36 = vpack.c.bf16 %v688_v29, %v687_v34 }
 0x3bd   :  { %796 = vmatmul.bf16.gmra.mxu0 %v700_v36 }
 0x3c0   :  { %v661_v11 = vpop.f32.mrf.mxu3 }
 0x3c1   :  { %v689_v8 = vmul.f32 %v661_v11, %v1764_v24 }
 0x3c8   :  { %v663_v39 = vpop.f32.mrf.mxu3 }
 0x3c9   :  { %v690_v27 = vmul.f32 %v663_v39, %v1768_v28 }
 0x3cb   :  { %v701_v40 = vpack.c.bf16 %v690_v27, %v689_v8 }
 0x3cd   :  { %801 = vmatmul.bf16.gmra.mxu0 %v701_v40 }
 0x3d0   :  { %v666_v22 = vpop.f32.mrf.mxu3 }
 0x3d1   :  { %v691_v43 = vmul.f32 %v666_v22, %v1760_v21 }
 0x3d8   :  { %v668_v42 = vpop.f32.mrf.mxu3 }
 0x3d9   :  { %v692_v12 = vmul.f32 %v668_v42, %v1766_v25 }
 0x3db   :  { %v702_v44 = vpack.c.bf16 %v692_v12, %v691_v43 }
 0x3dd   :  { %806 = vmatmul.bf16.gmra.mxu0 %v702_v44 }
 0x3e0   :  { %v671_v16 = vpop.f32.mrf.mxu3 }
 0x3e1   :  { %v693_v3 = vmul.f32 %v671_v16, %v1756_v18 }
 0x3e8   :  { %v673_v45 = vpop.f32.mrf.mxu3 }
 0x3e9   :  { %v694_v2 = vmul.f32 %v673_v45, %v1762_v23 }
 0x3eb   :  { %v703_v13 = vpack.c.bf16 %v694_v2, %v693_v3 }
 0x3ed   :  { %811 = vmatmul.bf16.gmra.mxu0 %v703_v13 }
 0x3f0   :  { %v676_v14 = vpop.f32.mrf.mxu3 }
 0x3f1   :  { %v695_v37 = vmul.f32 %v676_v14, %v1754_v17 }
 0x3f8   :  { %v678_v15 = vpop.f32.mrf.mxu3 }
 0x3f9   :  { %v696_v7 = vmul.f32 %v678_v15, %v1758_v20 }
 0x3fb   :  { %v704_v47 = vpack.c.bf16 %v696_v7, %v695_v37 }
 0x3fd   :  { %816 = vmatmul.bf16.gmra.mxu0 %v704_v47 }
 0x40a   :  { %v782_v49 = vpop.f32.mrf.mxu0 }
 0x40b   :  { %v783_v51 = vadd.f32 %v1429_v50, %v782_v49 }
 0x40d   :  { %v822_v54 = vmax.f32 %v783_v51, 0.0 }
 0x412   :  { %v784_v6 = vpop.f32.mrf.mxu0 }
 0x413   :  { %v785_v53 = vadd.f32 %v1429_v50, %v784_v6 }
 0x415   :  { %v823_v55 = vmax.f32 %v785_v53, 0.0 }
 0x417   :  { %v838_v5 = vpack.c.bf16 %v823_v55, %v822_v54 }
 0x41a   :  { %v787_v30 = vpop.f32.mrf.mxu0 }
 0x41b   :  { %v788_v56 = vadd.f32 %v1429_v50, %v787_v30 }
 0x41d   :  { %v824_v61 = vmax.f32 %v788_v56, 0.0 }
 0x422   :  { %v789_v59 = vpop.f32.mrf.mxu0 }
 0x423   :  { %v790_v60 = vadd.f32 %v1429_v50, %v789_v59 }
 0x425   :  { %v825_v62 = vmax.f32 %v790_v60, 0.0 }
 0x427   :  { %v839_v1 = vpack.c.bf16 %v825_v62, %v824_v61 }
 0x42a   :  { %v792_v31 = vpop.f32.mrf.mxu0 }
 0x42b   :  { %v793_v33 = vadd.f32 %v1429_v50, %v792_v31 }
 0x42d   :  { %v826_v36 = vmax.f32 %v793_v33, 0.0 }
 0x432   :  { %v794_v34 = vpop.f32.mrf.mxu0 }
 0x433   :  { %v795_v29 = vadd.f32 %v1429_v50, %v794_v34 }
 0x435   :  { %v827_v11 = vmax.f32 %v795_v29, 0.0 }
 0x437   :  { %v840_v39 = vpack.c.bf16 %v827_v11, %v826_v36  ;;  %v1404_v11 = vld [vmem:[#allocation7 + $0x30] sm:$0xff] }
 0x43a   :  { %v797_v8 = vpop.f32.mrf.mxu0 }
 0x43b   :  { %v798_v27 = vadd.f32 %v1429_v50, %v797_v8  ;;  %v1403_v8 = vld [vmem:[#allocation7 + $0x28] sm:$0xff] }
 0x43d   :  { %v828_v42 = vmax.f32 %v798_v27, 0.0 }
 0x442   :  { %v799_v40 = vpop.f32.mrf.mxu0 }
 0x443   :  { %v800_v22 = vadd.f32 %v1429_v50, %v799_v40 }
 0x445   :  { %v829_v43 = vmax.f32 %v800_v22, 0.0 }
 0x447   :  { %v841_v12 = vpack.c.bf16 %v829_v43, %v828_v42 }
 0x44a   :  { %v802_v44 = vpop.f32.mrf.mxu0 }
 0x44b   :  { %v803_v62 = vadd.f32 %v1429_v50, %v802_v44 }
 0x44d   :  { %v830_v29 = vmax.f32 %v803_v62, 0.0  ;;  %v1406_v62 = vld [vmem:[#allocation8] sm:$0xff] }
 0x452   :  { %v804_v16 = vpop.f32.mrf.mxu0 }
 0x453   :  { %v805_v59 = vadd.f32 %v1429_v50, %v804_v16 }
 0x455   :  { %v831_v33 = vmax.f32 %v805_v59, 0.0 }
 0x457   :  { %v842_v36 = vpack.c.bf16 %v831_v33, %v830_v29 }
 0x45a   :  { %v807_v45 = vpop.f32.mrf.mxu0 }
 0x45b   :  { %v808_v30 = vadd.f32 %v1429_v50, %v807_v45 }
 0x45d   :  { %v832_v31 = vmax.f32 %v808_v30, 0.0  ;;  %v1408_v30 = vld [vmem:[#allocation8 + $0x10] sm:$0xff] }
 0x462   :  { %v809_v3 = vpop.f32.mrf.mxu0 }
 0x463   :  { %v810_v53 = vadd.f32 %v1429_v50, %v809_v3 }
 0x465   :  { %v833_v60 = vmax.f32 %v810_v53, 0.0 }
 0x467   :  { %v843_v34 = vpack.c.bf16 %v833_v60, %v832_v31 }
 0x46a   :  { %v812_v2 = vpop.f32.mrf.mxu0 }
 0x46b   :  { %v813_v49 = vadd.f32 %v1429_v50, %v812_v2 }
 0x46d   :  { %v834_v56 = vmax.f32 %v813_v49, 0.0 }
 0x472   :  { %v814_v13 = vpop.f32.mrf.mxu0 }
 0x473   :  { %v815_v7 = vadd.f32 %v1429_v50, %v814_v13 }
 0x475   :  { %v835_v54 = vmax.f32 %v815_v7, 0.0 }
 0x477   :  { %v844_v61 = vpack.c.bf16 %v835_v54, %v834_v56  ;;  %v1407_v56 = vld [vmem:[#allocation8 + $0x8] sm:$0xff] }
 0x47a   :  { %v817_v14 = vpop.f32.mrf.mxu0 }
 0x47b   :  { %v818_v15 = vadd.f32 %v1429_v50, %v817_v14 }
 0x47d   :  { %v836_v51 = vmax.f32 %v818_v15, 0.0 }
 0x482   :  { %v819_v37 = vpop.f32.mrf.mxu0 }
 0x483   :  { %v820_v47 = vadd.f32 %v1429_v50, %v819_v37  ;;  %v1405_v50 = vld [vmem:[#allocation7 + $0x38] sm:$0xff] }
 0x484   :  { %987 = vmatpush.bf16.msrb.mxu2 %v1405_v50 }
 0x485   :  { %v837_v6 = vmax.f32 %v820_v47, 0.0 }
 0x487   :  { %v845_v55 = vpack.c.bf16 %v837_v6, %v836_v51  ;;  %v1411_v6 = vld [vmem:[#allocation8 + $0x28] sm:$0xff] }
 0x488   :  { %988 = vmatpush.bf16.msrb.mxu2 %v1404_v11 }
 0x489   :  { %846 = vmatpush.bf16.msrb.mxu1 %v845_v55 }
 0x48c   :  { %989 = vmatpush.bf16.msrb.mxu2 %v1403_v8 }
 0x48d   :  { %847 = vmatpush.bf16.msrb.mxu1 %v844_v61 }
 0x491   :  { %848 = vmatpush.bf16.msrb.mxu1 %v843_v34 }
 0x495   :  { %849 = vmatpush.bf16.msrb.mxu1 %v842_v36 }
 0x499   :  { %850 = vmatpush.bf16.msrb.mxu1 %v841_v12 }
 0x49d   :  { %851 = vmatpush.bf16.msrb.mxu1 %v840_v39 }
 0x4a1   :  { %852 = vmatpush.bf16.msrb.mxu1 %v839_v1  ;;  %v1402_v1 = vld [vmem:[#allocation7 + $0x20] sm:$0xff] }
 0x4a2   :  { %990 = vmatpush.bf16.msrb.mxu2 %v1402_v1 }
 0x4a5   :  { %853 = vmatpush.bf16.msrb.mxu1 %v838_v5  ;;  %v1401_v5 = vld [vmem:[#allocation7 + $0x18] sm:$0xff] }
 0x4a6   :  { %991 = vmatpush.bf16.msrb.mxu2 %v1401_v5 }
 0x4a8   :  { %854 = vmatmul.bf16.vlgmr.msrb.gmra.mxu1 %v1710_v26  ;;  %v1400_v26 = vld [vmem:[#allocation7 + $0x10] sm:$0xff] }
 0x4aa   :  { %992 = vmatpush.bf16.msrb.mxu2 %v1400_v26 }
 0x4b8   :  { %859 = vmatmul.bf16.gmra.mxu1 %v1725_v35  ;;  %v1399_v35 = vld [vmem:[#allocation7 + $0x8] sm:$0xff] }
 0x4b9   :  { %993 = vmatpush.bf16.msrb.mxu2 %v1399_v35 }
 0x4c8   :  { %864 = vmatmul.bf16.gmra.mxu1 %v1728_v41  ;;  %v1398_v41 = vld [vmem:[#allocation7] sm:$0xff] }
 0x4c9   :  { %994 = vmatpush.bf16.msrb.mxu2 %v1398_v41 }
 0x4d8   :  { %869 = vmatmul.bf16.gmra.mxu1 %v1731_v46 }
 0x4e8   :  { %874 = vmatmul.bf16.gmra.mxu1 %v1734_v52 }
 0x4f8   :  { %879 = vmatmul.bf16.gmra.mxu1 %v1737_v57 }
 0x508   :  { %884 = vmatmul.bf16.gmra.mxu1 %v1740_v63 }
 0x518   :  { %889 = vmatmul.bf16.gmra.mxu1 %v1743_v4 }
 0x525   :  { %v855_v46 = vpop.f32.mrf.mxu1 }
 0x526   :  { %v895_v57 = vmul.f32 %v855_v46, %v1817_v9 }
 0x52d   :  { %v857_v52 = vpop.f32.mrf.mxu1 }
 0x52e   :  { %v896_v39 = vmul.f32 %v857_v52, %v1812_v10 }
 0x530   :  { %v911_v27 = vpack.c.bf16 %v896_v39, %v895_v57 }
 0x532   :  { %995 = vmatmul.bf16.vlgmr.msrb.gmra.mxu2 %v911_v27 }
 0x535   :  { %v860_v40 = vpop.f32.mrf.mxu1 }
 0x536   :  { %v897_v42 = vmul.f32 %v860_v40, %v1795_v58 }
 0x53d   :  { %v862_v22 = vpop.f32.mrf.mxu1 }
 0x53e   :  { %v898_v43 = vmul.f32 %v862_v22, %v1805_v19 }
 0x540   :  { %v912_v63 = vpack.c.bf16 %v898_v43, %v897_v42 }
 0x542   :  { %1000 = vmatmul.bf16.gmra.mxu2 %v912_v63 }
 0x545   :  { %v865_v12 = vpop.f32.mrf.mxu1 }
 0x546   :  { %v899_v4 = vmul.f32 %v865_v12, %v1789_v48 }
 0x54d   :  { %v867_v44 = vpop.f32.mrf.mxu1 }
 0x54e   :  { %v900_v16 = vmul.f32 %v867_v44, %v1799_v0 }
 0x550   :  { %v913_v45 = vpack.c.bf16 %v900_v16, %v899_v4 }
 0x552   :  { %1005 = vmatmul.bf16.gmra.mxu2 %v913_v45 }
 0x555   :  { %v870_v9 = vpop.f32.mrf.mxu1 }
 0x556   :  { %v901_v3 = vmul.f32 %v870_v9, %v1782_v38  ;;  %v1413_v38 = vld [vmem:[#allocation8 + $0x38] sm:$0xff] }
 0x557   :  { %1128 = vmatpush.bf16.msrb.mxu3 %v1413_v38 }
 0x55d   :  { %v872_v10 = vpop.f32.mrf.mxu1 }
 0x55e   :  { %v902_v2 = vmul.f32 %v872_v10, %v1777_v32  ;;  %v1412_v32 = vld [vmem:[#allocation8 + $0x30] sm:$0xff] }
 0x55f   :  { %1129 = vmatpush.bf16.msrb.mxu3 %v1412_v32 }
 0x560   :  { %v914_v13 = vpack.c.bf16 %v902_v2, %v901_v3 }
 0x562   :  { %1010 = vmatmul.bf16.gmra.mxu2 %v914_v13 }
 0x563   :  { %1130 = vmatpush.bf16.msrb.mxu3 %v1411_v6 }
 0x565   :  { %v875_v58 = vpop.f32.mrf.mxu1 }
 0x566   :  { %v903_v14 = vmul.f32 %v875_v58, %v1764_v24  ;;  %v1410_v24 = vld [vmem:[#allocation8 + $0x20] sm:$0xff] }
 0x567   :  { %1131 = vmatpush.bf16.msrb.mxu3 %v1410_v24 }
 0x56d   :  { %v877_v19 = vpop.f32.mrf.mxu1 }
 0x56e   :  { %v904_v15 = vmul.f32 %v877_v19, %v1768_v28 }
 0x570   :  { %v915_v37 = vpack.c.bf16 %v904_v15, %v903_v14 }
 0x572   :  { %1015 = vmatmul.bf16.gmra.mxu2 %v915_v37 }
 0x575   :  { %v880_v48 = vpop.f32.mrf.mxu1 }
 0x576   :  { %v905_v7 = vmul.f32 %v880_v48, %v1760_v21  ;;  %v1409_v21 = vld [vmem:[#allocation8 + $0x18] sm:$0xff] }
 0x577   :  { %1132 = vmatpush.bf16.msrb.mxu3 %v1409_v21 }
 0x57b   :  { %1133 = vmatpush.bf16.msrb.mxu3 %v1408_v30  ;;  %v1431_v30 = vld [vmem:[%s1952_s11] ss:$0 sm:$0xff]  ;;  %s1569_s11 = smov [#allocation10]  }
 0x57c   :  { %s1197_s29 = sshll.u32 %s1569_s11, 4  ;;  %s1198_s29 = int_to_ptr.vmem [resolvable:$true] %s1197_s29 }
 0x57d   :  { %v882_v0 = vpop.f32.mrf.mxu1 }
 0x57e   :  { %v906_v47 = vmul.f32 %v882_v0, %v1766_v25 }
 0x57f   :  { %1134 = vmatpush.bf16.msrb.mxu3 %v1407_v56 }
 0x580   :  { %v916_v49 = vpack.c.bf16 %v906_v47, %v905_v7 }
 0x582   :  { %1020 = vmatmul.bf16.gmra.mxu2 %v916_v49 }
 0x583   :  { %1135 = vmatpush.bf16.msrb.mxu3 %v1406_v62 }
 0x585   :  { %v885_v51 = vpop.f32.mrf.mxu1 }
 0x586   :  { %v907_v28 = vmul.f32 %v885_v51, %v1756_v18 }
 0x58d   :  { %v887_v53 = vpop.f32.mrf.mxu1 }
 0x58e   :  { %v908_v54 = vmul.f32 %v887_v53, %v1762_v23  ;;  %v1430_v23 = vld [vmem:[%s1950_s9] ss:$0 sm:$0xff] }
 0x590   :  { %v917_v55 = vpack.c.bf16 %v908_v54, %v907_v28 }
 0x592   :  { %1025 = vmatmul.bf16.gmra.mxu2 %v917_v55 }
 0x595   :  { %v890_v25 = vpop.f32.mrf.mxu1 }
 0x596   :  { %v909_v60 = vmul.f32 %v890_v25, %v1754_v17 }
 0x59d   :  { %v892_v59 = vpop.f32.mrf.mxu1 }
 0x59e   :  { %v910_v61 = vmul.f32 %v892_v59, %v1758_v20 }
 0x5a0   :  { %v918_v31 = vpack.c.bf16 %v910_v61, %v909_v60 }
 0x5a2   :  { %1030 = vmatmul.bf16.gmra.mxu2 %v918_v31 }
 0x5b5   :  { %v996_v18 = vpop.f32.mrf.mxu2 }
 0x5b6   :  { %v997_v33 = vadd.f32 %v1430_v23, %v996_v18 }
 0x5b8   :  { %v1036_v36 = vmax.f32 %v997_v33, 0.0 }
 0x5bd   :  { %v998_v34 = vpop.f32.mrf.mxu2 }
 0x5be   :  { %v999_v29 = vadd.f32 %v1430_v23, %v998_v34 }
 0x5c0   :  { %v1037_v50 = vmax.f32 %v999_v29, 0.0 }
 0x5c2   :  { %v1052_v11 = vpack.c.bf16 %v1037_v50, %v1036_v36 }
 0x5c4   :  { %1136 = vmatmul.bf16.vlgmr.msrb.gmra.mxu3 %v1052_v11 }
 0x5c5   :  { %v1001_v8 = vpop.f32.mrf.mxu2 }
 0x5c6   :  { %v1002_v17 = vadd.f32 %v1430_v23, %v1001_v8 }
 0x5c8   :  { %v1038_v5 = vmax.f32 %v1002_v17, 0.0 }
 0x5cd   :  { %v1003_v1 = vpop.f32.mrf.mxu2 }
 0x5ce   :  { %v1004_v20 = vadd.f32 %v1430_v23, %v1003_v1 }
 0x5d0   :  { %v1039_v26 = vmax.f32 %v1004_v20, 0.0 }
 0x5d2   :  { %v1053_v35 = vpack.c.bf16 %v1039_v26, %v1038_v5 }
 0x5d4   :  { %1141 = vmatmul.bf16.gmra.mxu3 %v1053_v35 }
 0x5d5   :  { %v1006_v41 = vpop.f32.mrf.mxu2 }
 0x5d6   :  { %v1007_v46 = vadd.f32 %v1430_v23, %v1006_v41 }
 0x5d8   :  { %v1040_v39 = vmax.f32 %v1007_v46, 0.0 }
 0x5dd   :  { %v1008_v52 = vpop.f32.mrf.mxu2 }
 0x5de   :  { %v1009_v57 = vadd.f32 %v1430_v23, %v1008_v52 }
 0x5e0   :  { %v1041_v27 = vmax.f32 %v1009_v57, 0.0 }
 0x5e2   :  { %v1054_v40 = vpack.c.bf16 %v1041_v27, %v1040_v39 }
 0x5e4   :  { %1146 = vmatmul.bf16.gmra.mxu3 %v1054_v40 }
 0x5e5   :  { %v1011_v22 = vpop.f32.mrf.mxu2 }
 0x5e6   :  { %v1012_v42 = vadd.f32 %v1430_v23, %v1011_v22 }
 0x5e8   :  { %v1042_v12 = vmax.f32 %v1012_v42, 0.0 }
 0x5ed   :  { %v1013_v43 = vpop.f32.mrf.mxu2 }
 0x5ee   :  { %v1014_v63 = vadd.f32 %v1430_v23, %v1013_v43 }
 0x5f0   :  { %v1043_v44 = vmax.f32 %v1014_v63, 0.0 }
 0x5f2   :  { %v1055_v4 = vpack.c.bf16 %v1043_v44, %v1042_v12 }
 0x5f4   :  { %1151 = vmatmul.bf16.gmra.mxu3 %v1055_v4 }
 0x5f5   :  { %v1016_v16 = vpop.f32.mrf.mxu2 }
 0x5f6   :  { %v1017_v45 = vadd.f32 %v1430_v23, %v1016_v16 }
 0x5f8   :  { %v1044_v3 = vmax.f32 %v1017_v45, 0.0 }
 0x5fd   :  { %v1018_v9 = vpop.f32.mrf.mxu2 }
 0x5fe   :  { %v1019_v10 = vadd.f32 %v1430_v23, %v1018_v9 }
 0x600   :  { %v1045_v2 = vmax.f32 %v1019_v10, 0.0 }
 0x602   :  { %v1056_v13 = vpack.c.bf16 %v1045_v2, %v1044_v3 }
 0x604   :  { %1156 = vmatmul.bf16.gmra.mxu3 %v1056_v13 }
 0x605   :  { %v1021_v58 = vpop.f32.mrf.mxu2 }
 0x606   :  { %v1022_v19 = vadd.f32 %v1430_v23, %v1021_v58 }
 0x608   :  { %v1046_v37 = vmax.f32 %v1022_v19, 0.0 }
 0x60d   :  { %v1023_v14 = vpop.f32.mrf.mxu2 }
 0x60e   :  { %v1024_v15 = vadd.f32 %v1430_v23, %v1023_v14 }
 0x610   :  { %v1047_v48 = vmax.f32 %v1024_v15, 0.0 }
 0x612   :  { %v1057_v0 = vpack.c.bf16 %v1047_v48, %v1046_v37 }
 0x614   :  { %1161 = vmatmul.bf16.gmra.mxu3 %v1057_v0 }
 0x615   :  { %v1026_v7 = vpop.f32.mrf.mxu2 }
 0x616   :  { %v1027_v47 = vadd.f32 %v1430_v23, %v1026_v7 }
 0x618   :  { %v1048_v32 = vmax.f32 %v1027_v47, 0.0 }
 0x61d   :  { %v1028_v49 = vpop.f32.mrf.mxu2 }
 0x61e   :  { %v1029_v38 = vadd.f32 %v1430_v23, %v1028_v49 }
 0x620   :  { %v1049_v51 = vmax.f32 %v1029_v38, 0.0 }
 0x622   :  { %v1058_v6 = vpack.c.bf16 %v1049_v51, %v1048_v32 }
 0x624   :  { %1166 = vmatmul.bf16.gmra.mxu3 %v1058_v6 }
 0x625   :  { %v1031_v24 = vpop.f32.mrf.mxu2 }
 0x626   :  { %v1032_v53 = vadd.f32 %v1430_v23, %v1031_v24 }
 0x628   :  { %v1050_v55 = vmax.f32 %v1032_v53, 0.0 }
 0x62d   :  { %v1033_v28 = vpop.f32.mrf.mxu2 }
 0x62e   :  { %v1034_v54 = vadd.f32 %v1430_v23, %v1033_v28 }
 0x630   :  { %v1051_v21 = vmax.f32 %v1034_v54, 0.0 }
 0x632   :  { %v1059_v25 = vpack.c.bf16 %v1051_v21, %v1050_v55 }
 0x634   :  { %1171 = vmatmul.bf16.gmra.mxu3 %v1059_v25 }
 0x647   :  { %v1137_v56 = vpop.f32.mrf.mxu3 }
 0x648   :  { %v1138_v59 = vadd.f32 %v1431_v30, %v1137_v56 }
 0x64a   :  { %1177 = vst [vmem:[#allocation10] sm:$0xff] %v1138_v59 }
 0x64f   :  { %v1139_v60 = vpop.f32.mrf.mxu3 }
 0x650   :  { %v1140_v61 = vadd.f32 %v1431_v30, %v1139_v60 }
 0x652   :  { %1178 = vst [vmem:[#allocation10 + $0x8] sm:$0xff] %v1140_v61 }
 0x657   :  { %v1142_v62 = vpop.f32.mrf.mxu3 }
 0x658   :  { %v1143_v31 = vadd.f32 %v1431_v30, %v1142_v62 }
 0x65a   :  { %1179 = vst [vmem:[#allocation10 + $0x10] sm:$0xff] %v1143_v31 }
 0x65f   :  { %v1144_v18 = vpop.f32.mrf.mxu3 }
 0x660   :  { %v1145_v33 = vadd.f32 %v1431_v30, %v1144_v18 }
 0x662   :  { %1180 = vst [vmem:[#allocation10 + $0x18] sm:$0xff] %v1145_v33 }
 0x667   :  { %v1147_v23 = vpop.f32.mrf.mxu3 }
 0x668   :  { %v1148_v34 = vadd.f32 %v1431_v30, %v1147_v23 }
 0x66a   :  { %1181 = vst [vmem:[#allocation10 + $0x20] sm:$0xff] %v1148_v34 }
 0x66f   :  { %v1149_v29 = vpop.f32.mrf.mxu3 }
 0x670   :  { %v1150_v36 = vadd.f32 %v1431_v30, %v1149_v29 }
 0x672   :  { %1182 = vst [vmem:[#allocation10 + $0x28] sm:$0xff] %v1150_v36 }
 0x677   :  { %v1152_v50 = vpop.f32.mrf.mxu3 }
 0x678   :  { %v1153_v11 = vadd.f32 %v1431_v30, %v1152_v50 }
 0x67a   :  { %1183 = vst [vmem:[#allocation10 + $0x30] sm:$0xff] %v1153_v11 }
 0x67f   :  { %v1154_v8 = vpop.f32.mrf.mxu3 }
 0x680   :  { %v1155_v17 = vadd.f32 %v1431_v30, %v1154_v8 }
 0x682   :  { %1184 = vst [vmem:[#allocation10 + $0x38] sm:$0xff] %v1155_v17 }
 0x687   :  { %v1157_v1 = vpop.f32.mrf.mxu3 }
 0x688   :  { %v1158_v20 = vadd.f32 %v1431_v30, %v1157_v1 }
 0x68a   :  { %1185 = vst [vmem:[#allocation10 + $0x40] sm:$0xff] %v1158_v20 }
 0x68f   :  { %v1159_v5 = vpop.f32.mrf.mxu3 }
 0x690   :  { %v1160_v26 = vadd.f32 %v1431_v30, %v1159_v5 }
 0x692   :  { %1186 = vst [vmem:[#allocation10 + $0x48] sm:$0xff] %v1160_v26 }
 0x697   :  { %v1162_v35 = vpop.f32.mrf.mxu3 }
 0x698   :  { %v1163_v41 = vadd.f32 %v1431_v30, %v1162_v35 }
 0x69a   :  { %1187 = vst [vmem:[#allocation10 + $0x50] sm:$0xff] %v1163_v41 }
 0x69f   :  { %v1164_v46 = vpop.f32.mrf.mxu3 }
 0x6a0   :  { %v1165_v52 = vadd.f32 %v1431_v30, %v1164_v46 }
 0x6a2   :  { %1188 = vst [vmem:[#allocation10 + $0x58] sm:$0xff] %v1165_v52 }
 0x6a7   :  { %v1167_v57 = vpop.f32.mrf.mxu3 }
 0x6a8   :  { %v1168_v39 = vadd.f32 %v1431_v30, %v1167_v57 }
 0x6aa   :  { %1189 = vst [vmem:[#allocation10 + $0x60] sm:$0xff] %v1168_v39 }
 0x6af   :  { %v1169_v27 = vpop.f32.mrf.mxu3 }
 0x6b0   :  { %v1170_v40 = vadd.f32 %v1431_v30, %v1169_v27 }
 0x6b2   :  { %1190 = vst [vmem:[#allocation10 + $0x68] sm:$0xff] %v1170_v40 }
 0x6b7   :  { %v1172_v22 = vpop.f32.mrf.mxu3 }
 0x6b8   :  { %v1173_v42 = vadd.f32 %v1431_v30, %v1172_v22 }
 0x6ba   :  { %1191 = vst [vmem:[#allocation10 + $0x70] sm:$0xff] %v1173_v42 }
 0x6bf   :  { %v1174_v43 = vpop.f32.mrf.mxu3 }
 0x6c0   :  { %v1175_v63 = vadd.f32 %v1431_v30, %v1174_v43 }
 0x6c2   :  { %1192 = vst [vmem:[#allocation10 + $0x78] sm:$0xff] %v1175_v63 }
 0x6c3   :  { %1205 = dma.vmem_to_hbm [thread:$0]  %s1198_s29, 2048, %s1200_s3, [#allocation4], %s1564_s15, %s1564_s15, %s1565_s16  }
 0x6c4   :  { %1558 = dma.done.wait [#allocation4], 2048  }
 0x6c5   :  { %1559 = vsyncadd [#allocation4], 4294965248 }
 0x6c6   :  { %1210 = vsyncpa [#allocation3], 1 }
 0x6c7   :  { %1211 = vsyncpa [#allocation6], 1 }
 0x6c8   :  { %1212 = vsyncpa [#allocation9], 1 }
 0x6c9   :  { %1213 = vsyncpa [#allocation4], 1 }

</bundles_post_ra>
